<compile_context>
chip_gen: v5e
topology: v5e:2x2
jax: 0.10.0
libtpu: 0.0.40
codegen_flags: <defaults>
</compile_context>

<pallas_src>
import functools

import jax
import jax.numpy as jnp
from jax.experimental import pallas as pl
from jax.experimental.pallas import tpu as pltpu


def _round_up(x, m):
    return (x + m - 1) // m * m


# ------------------------------ Pallas kernel ------------------------------ #
def _basenet_kernel(h, w, x_ref, pscale_ref, wk_ref, bc_ref,
                    w1_ref, b1_ref, w2_ref, b2_ref,
                    logits_ref, feat_ref):
    """One grid step per image (grid=(N,), 'parallel').

    The padded input plane is stored flattened as [(H+4)*(W+2), C] bf16.  For
    "extended output row" e = r*(W+2)+c the 3x3 tap (di,dj) lives at flat
    offset e + di*(W+2) + dj, so the whole conv is a single MXU matmul
    [H*(W+2), 9C] @ [9C, Fpad] after lane-concatenating the shifted views.
    The 2 wrap columns per row are zeroed by the pooling mask."""
    wp2 = w + 2
    rows = h * wp2                     # extended output rows (incl. wrap cols)
    span = rows + 2 * wp2              # covers the di in {0,1,2} row offsets

    win = x_ref[0]                                               # [rows_pad, C] bf16

    # dj (column) shifts -> lane concat, then di (row) shifts -> lane concat.
    # Lane order is (di*3 + dj)*C + c, matching the repacked weight.
    wincat = jnp.concatenate([win[dj:dj + span, :] for dj in range(3)],
                             axis=-1)                            # [span, 3C]
    patches = jnp.concatenate(
        [wincat[di * wp2:di * wp2 + rows, :] for di in range(3)],
        axis=-1)                                                 # [rows, 9C]

    # Single fused-K conv matmul, f32 accumulation on the MXU.
    conv = jnp.dot(patches, wk_ref[...],
                   preferred_element_type=jnp.float32)           # [rows, Fpad]
    conv = jnp.maximum(conv + bc_ref[...], 0.0)                  # bias+ReLU, f32 VPU

    # Global average pool as a masked-ones matmul; pscale carries 1/(H*W) on
    # the W valid columns of every extended row and 0 on the 2 wrap columns.
    pmask = jnp.broadcast_to(pscale_ref[...], (8, rows))         # sublane bcast
    pooled = jnp.dot(pmask, conv,
                     preferred_element_type=jnp.float32)         # [8, Fpad]

    # Bottleneck + classifier head (8 identical rows; row 0 is extracted).
    # For large N this head would be better batched across images outside the
    # per-image grid step; at small N the fused form is cheaper end-to-end.
    emb = jnp.maximum(
        jnp.dot(pooled.astype(jnp.bfloat16), w1_ref[...],
                preferred_element_type=jnp.float32) + b1_ref[...], 0.0)
    logits = (jnp.dot(emb.astype(jnp.bfloat16), w2_ref[...],
                      preferred_element_type=jnp.float32) + b2_ref[...])
    feat_ref[0] = emb                                            # [8, Epad]
    logits_ref[0] = logits                                       # [8, Cpad]


# --------------------------- param preparation ------------------------------ #
def prepare_params(params, *, c_in, fdim, embedding_dim, num_classes):
    """One-time repack: conv weight flattened to [9*C, Fpad] (fused-K layout),
    every matmul weight lane-padded to 128 and cast to bf16; biases f32 rows."""
    fpad = _round_up(fdim, 128)
    epad = _round_up(embedding_dim, 128)
    cpad = _round_up(num_classes, 128)

    # conv_w: [fdim, c_in, 3, 3] (OIHW) -> [di, dj, c, f] -> [(di*3+dj)*C + c, Fpad]
    wk = jnp.transpose(params["conv_w"], (2, 3, 1, 0)).reshape(9, c_in, fdim)
    wk = jnp.pad(wk, ((0, 0), (0, 0), (0, fpad - fdim)))
    wk = wk.reshape(9 * c_in, fpad).astype(jnp.bfloat16)
    bc = jnp.pad(params["conv_b"], (0, fpad - fdim)).reshape(1, fpad)
    w1 = jnp.pad(params["bottleneck_w"],
                 ((0, fpad - fdim), (0, epad - embedding_dim))).astype(jnp.bfloat16)
    b1 = jnp.pad(params["bottleneck_b"],
                 (0, epad - embedding_dim)).reshape(1, epad)
    w2 = jnp.pad(params["classifier_w"],
                 ((0, epad - embedding_dim), (0, cpad - num_classes))).astype(jnp.bfloat16)
    b2 = jnp.pad(params["classifier_b"],
                 (0, cpad - num_classes)).reshape(1, cpad)
    return {"wk": wk, "bc": bc.astype(jnp.float32),
            "w1": w1, "b1": b1.astype(jnp.float32),
            "w2": w2, "b2": b2.astype(jnp.float32)}


# ------------------------------- forward ------------------------------------ #
@functools.partial(jax.jit, static_argnames=("num_classes", "embedding_dim"))
def basenet_forward(x, prepped, *, num_classes, embedding_dim):
    """x: [N, C, H, W] f32 -> (logits [N, num_classes], feat [N, embedding_dim])."""
    n, c, h, w = x.shape
    wp2 = w + 2
    rows = h * wp2
    rows_pad = (h + 4) * wp2            # halo (1,1) + 2 slack rows for shifts

    fpad = prepped["wk"].shape[-1]
    epad = prepped["w1"].shape[-1]
    cpad = prepped["w2"].shape[-1]

    # NCHW -> padded NHWC in ONE pad (halo + bottom slack) with the bf16 cast
    # fused in; the flattening reshape is layout-free.
    x_nhwc = jnp.transpose(x, (0, 2, 3, 1))
    x_pad = jnp.pad(x_nhwc, ((0, 0), (1, 3), (1, 1), (0, 0))).astype(jnp.bfloat16)
    x_flat = x_pad.reshape(n, rows_pad, c)

    # Pool scale row: 1/(H*W) on valid columns, 0 on the 2 wrap columns.
    pscale = jnp.where(jnp.arange(rows) % wp2 < w,
                       1.0 / (h * w), 0.0).astype(jnp.float32).reshape(1, rows)

    kernel = functools.partial(_basenet_kernel, h, w)

    flops = int(n * (2 * rows * 9 * c * fpad          # fused conv matmul
                     + 2 * 8 * rows * fpad            # pooling matmul
                     + 2 * 8 * (fpad * epad + epad * cpad)))
    bytes_accessed = int(
        x_flat.size * x_flat.dtype.itemsize + pscale.size * 4
        + sum(v.size * v.dtype.itemsize for v in prepped.values())
        + n * 8 * (cpad + epad) * 4)

    logits_pad, feat_pad = pl.pallas_call(
        kernel,
        out_shape=(
            jax.ShapeDtypeStruct((n, 8, cpad), jnp.float32),
            jax.ShapeDtypeStruct((n, 8, epad), jnp.float32),
        ),
        grid_spec=pltpu.PrefetchScalarGridSpec(
            num_scalar_prefetch=0,
            grid=(n,),
            in_specs=[
                pl.BlockSpec((1, rows_pad, c), lambda i: (i, 0, 0)),
                pl.BlockSpec((1, rows), lambda i: (0, 0)),
                pl.BlockSpec((9 * c, fpad), lambda i: (0, 0)),
                pl.BlockSpec((1, fpad), lambda i: (0, 0)),
                pl.BlockSpec((fpad, epad), lambda i: (0, 0)),
                pl.BlockSpec((1, epad), lambda i: (0, 0)),
                pl.BlockSpec((epad, cpad), lambda i: (0, 0)),
                pl.BlockSpec((1, cpad), lambda i: (0, 0)),
            ],
            out_specs=(
                pl.BlockSpec((1, 8, cpad), lambda i: (i, 0, 0)),
                pl.BlockSpec((1, 8, epad), lambda i: (i, 0, 0)),
            ),
        ),
        compiler_params=pltpu.CompilerParams(
            dimension_semantics=("parallel",),
            # Actual footprint is << 1 MiB (x block ~92 KiB/buffer, weights
            # ~75 KiB, conv intermediate ~144 KiB); 8 MiB leaves headroom and
            # stays below v5e's 16 MiB scoped default.
            vmem_limit_bytes=8 * 1024 * 1024,
        ),
        cost_estimate=pl.CostEstimate(
            flops=flops, transcendentals=0, bytes_accessed=bytes_accessed),
    )(x_flat, pscale, prepped["wk"], prepped["bc"], prepped["w1"],
      prepped["b1"], prepped["w2"], prepped["b2"])

    logits = logits_pad[:, 0, :num_classes]
    feat = feat_pad[:, 0, :embedding_dim]
    return logits, feat


# ------------------------------ reference / init ---------------------------- #
def basenet_reference(x, params):
    """Pure-JAX f32 reference of the same synthetic BaseNet forward."""
    out = jax.lax.conv_general_dilated(
        x.astype(jnp.float32), params["conv_w"], window_strides=(1, 1),
        padding=((1, 1), (1, 1)), dimension_numbers=("NCHW", "OIHW", "NCHW"))
    out = jnp.maximum(out + params["conv_b"][None, :, None, None], 0.0)
    feat = out.mean(axis=(2, 3))
    emb = jnp.maximum(feat @ params["bottleneck_w"] + params["bottleneck_b"], 0.0)
    logits = emb @ params["classifier_w"] + params["classifier_b"]
    return logits, emb


def init_params(key, *, c_in, fdim, embedding_dim, num_classes):
    # TODO(synk): build_bottleneck/build_classifier return None in the abstract
    # base class; a concrete subclass defines them — shapes here are synthetic.
    k0, k1, k2 = jax.random.split(key, 3)
    return {
        "conv_w": 0.1 * jax.random.normal(k0, (fdim, c_in, 3, 3), jnp.float32),
        "conv_b": jnp.zeros((fdim,), jnp.float32),
        "bottleneck_w": 0.1 * jax.random.normal(k1, (fdim, embedding_dim),
                                                jnp.float32),
        "bottleneck_b": jnp.zeros((embedding_dim,), jnp.float32),
        "classifier_w": 0.1 * jax.random.normal(k2, (embedding_dim, num_classes),
                                                jnp.float32),
        "classifier_b": jnp.zeros((num_classes,), jnp.float32),
    }


if __name__ == "__main__":
    N, C_IN, H, W = 2, 4, 16, 16
    FDIM = 32            # backbone.out_features
    EMB = 32             # model_cfg.BOTTLENECK.HIDDEN_LAYERS[-1]
    NUM_CLASSES = 10

    key = jax.random.PRNGKey(0)
    kx, kp = jax.random.split(key)
    x = jax.random.normal(kx, (N, C_IN, H, W), jnp.float32)
    params = init_params(kp, c_in=C_IN, fdim=FDIM,
                         embedding_dim=EMB, num_classes=NUM_CLASSES)
    prepped = prepare_params(params, c_in=C_IN, fdim=FDIM,
                             embedding_dim=EMB, num_classes=NUM_CLASSES)

    logits, feat = basenet_forward(x, prepped, num_classes=NUM_CLASSES,
                                   embedding_dim=EMB)
    jax.block_until_ready((logits, feat))

    assert logits.shape == (N, NUM_CLASSES) and feat.shape == (N, EMB)
    ref_logits, ref_feat = basenet_reference(x, params)
    err_l = float(jnp.max(jnp.abs(logits - ref_logits)))
    err_f = float(jnp.max(jnp.abs(feat - ref_feat)))
    assert err_l < 5e-2 and err_f < 5e-2, (err_l, err_f)
    print("KERNEL_OK")
</pallas_src>

<mosaic_0001>
module attributes {stable_mosaic.version = 11 : i64} {
  func.func @_basenet_kernel(%arg0: i32, %arg1: memref<1x360x4xbf16, #tpu.memory_space<vmem>>, %arg2: memref<1x288xf32, #tpu.memory_space<vmem>>, %arg3: memref<36x128xbf16, #tpu.memory_space<vmem>>, %arg4: memref<1x128xf32, #tpu.memory_space<vmem>>, %arg5: memref<128x128xbf16, #tpu.memory_space<vmem>>, %arg6: memref<1x128xf32, #tpu.memory_space<vmem>>, %arg7: memref<128x128xbf16, #tpu.memory_space<vmem>>, %arg8: memref<1x128xf32, #tpu.memory_space<vmem>>, %arg9: memref<1x8x128xf32, #tpu.memory_space<vmem>>, %arg10: memref<1x8x128xf32, #tpu.memory_space<vmem>>) attributes {dimension_semantics = [#tpu.dimension_semantics<parallel>], iteration_bounds = array<i64: 2>, scalar_prefetch = 0 : i64, scratch_operands = 0 : i64, tpu.core_type = #tpu.core_type<tc>, window_params = [{transform_indices = @transform_0, window_bounds = array<i64: 1, 360, 4>}, {pipeline_mode = #tpu.pipeline_mode<synchronous>, transform_indices = @transform_1, window_bounds = array<i64: 1, 288>}, {pipeline_mode = #tpu.pipeline_mode<synchronous>, transform_indices = @transform_2, window_bounds = array<i64: 36, 128>}, {pipeline_mode = #tpu.pipeline_mode<synchronous>, transform_indices = @transform_3, window_bounds = array<i64: 1, 128>}, {pipeline_mode = #tpu.pipeline_mode<synchronous>, transform_indices = @transform_4, window_bounds = array<i64: 128, 128>}, {pipeline_mode = #tpu.pipeline_mode<synchronous>, transform_indices = @transform_5, window_bounds = array<i64: 1, 128>}, {pipeline_mode = #tpu.pipeline_mode<synchronous>, transform_indices = @transform_6, window_bounds = array<i64: 128, 128>}, {pipeline_mode = #tpu.pipeline_mode<synchronous>, transform_indices = @transform_7, window_bounds = array<i64: 1, 128>}, {transform_indices = @transform_8, window_bounds = array<i64: 1, 8, 128>}, {transform_indices = @transform_9, window_bounds = array<i64: 1, 8, 128>}]} {
    %c0 = arith.constant 0 : index
    %c0_0 = arith.constant 0 : index
    %c0_1 = arith.constant 0 : index
    %0 = vector.load %arg1[%c0, %c0_0, %c0_1] : memref<1x360x4xbf16, #tpu.memory_space<vmem>>, vector<1x360x4xbf16>
    %1 = vector.shape_cast %0 : vector<1x360x4xbf16> to vector<360x4xbf16>
    %2 = vector.extract_strided_slice %1 {offsets = [0, 0], sizes = [324, 4], strides = [1, 1]} : vector<360x4xbf16> to vector<324x4xbf16>
    %3 = vector.extract_strided_slice %1 {offsets = [1, 0], sizes = [324, 4], strides = [1, 1]} : vector<360x4xbf16> to vector<324x4xbf16>
    %4 = vector.extract_strided_slice %1 {offsets = [2, 0], sizes = [324, 4], strides = [1, 1]} : vector<360x4xbf16> to vector<324x4xbf16>
    %5 = tpu.concatenate %2, %3, %4 in 1 : vector<324x4xbf16>, vector<324x4xbf16>, vector<324x4xbf16> -> vector<324x12xbf16>
    %6 = vector.extract_strided_slice %5 {offsets = [0, 0], sizes = [288, 12], strides = [1, 1]} : vector<324x12xbf16> to vector<288x12xbf16>
    %7 = vector.extract_strided_slice %5 {offsets = [18, 0], sizes = [288, 12], strides = [1, 1]} : vector<324x12xbf16> to vector<288x12xbf16>
    %8 = vector.extract_strided_slice %5 {offsets = [36, 0], sizes = [288, 12], strides = [1, 1]} : vector<324x12xbf16> to vector<288x12xbf16>
    %9 = tpu.concatenate %6, %7, %8 in 1 : vector<288x12xbf16>, vector<288x12xbf16>, vector<288x12xbf16> -> vector<288x36xbf16>
    %c0_2 = arith.constant 0 : index
    %c0_3 = arith.constant 0 : index
    %10 = vector.load %arg3[%c0_2, %c0_3] : memref<36x128xbf16, #tpu.memory_space<vmem>>, vector<36x128xbf16>
    %cst = arith.constant dense<0.000000e+00> : vector<288x128xf32>
    %11 = tpu.matmul %9, %10, %cst {dimension_numbers = #tpu.dot_dimension_numbers<[1], [0], [0], [1], [0, 0, 1, 1], [], []>} : vector<288x36xbf16>, vector<36x128xbf16>, vector<288x128xf32> -> vector<288x128xf32>
    %c0_4 = arith.constant 0 : index
    %c0_5 = arith.constant 0 : index
    %12 = vector.load %arg4[%c0_4, %c0_5] : memref<1x128xf32, #tpu.memory_space<vmem>>, vector<1x128xf32>
    %13 = vector.broadcast %12 : vector<1x128xf32> to vector<288x128xf32>
    %14 = arith.addf %11, %13 : vector<288x128xf32>
    %cst_6 = arith.constant 0.000000e+00 : f32
    %15 = vector.broadcast %cst_6 : f32 to vector<288x128xf32>
    %16 = arith.maximumf %14, %15 : vector<288x128xf32>
    %c0_7 = arith.constant 0 : index
    %c0_8 = arith.constant 0 : index
    %17 = vector.load %arg2[%c0_7, %c0_8] : memref<1x288xf32, #tpu.memory_space<vmem>>, vector<1x288xf32>
    %18 = vector.shape_cast %17 : vector<1x288xf32> to vector<1x288xf32>
    %19 = vector.broadcast %18 : vector<1x288xf32> to vector<8x288xf32>
    %cst_9 = arith.constant dense<0.000000e+00> : vector<8x128xf32>
    %20 = tpu.matmul %19, %16, %cst_9 {dimension_numbers = #tpu.dot_dimension_numbers<[1], [0], [0], [1], [0, 0, 1, 1], [], []>} : vector<8x288xf32>, vector<288x128xf32>, vector<8x128xf32> -> vector<8x128xf32>
    %21 = arith.truncf %20 : vector<8x128xf32> to vector<8x128xbf16>
    %c0_10 = arith.constant 0 : index
    %c0_11 = arith.constant 0 : index
    %22 = vector.load %arg5[%c0_10, %c0_11] : memref<128x128xbf16, #tpu.memory_space<vmem>>, vector<128x128xbf16>
    %cst_12 = arith.constant dense<0.000000e+00> : vector<8x128xf32>
    %23 = tpu.matmul %21, %22, %cst_12 {dimension_numbers = #tpu.dot_dimension_numbers<[1], [0], [0], [1], [0, 0, 1, 1], [], []>} : vector<8x128xbf16>, vector<128x128xbf16>, vector<8x128xf32> -> vector<8x128xf32>
    %c0_13 = arith.constant 0 : index
    %c0_14 = arith.constant 0 : index
    %24 = vector.load %arg6[%c0_13, %c0_14] : memref<1x128xf32, #tpu.memory_space<vmem>>, vector<1x128xf32>
    %25 = vector.broadcast %24 : vector<1x128xf32> to vector<8x128xf32>
    %26 = arith.addf %23, %25 : vector<8x128xf32>
    %cst_15 = arith.constant 0.000000e+00 : f32
    %27 = vector.broadcast %cst_15 : f32 to vector<8x128xf32>
    %28 = arith.maximumf %26, %27 : vector<8x128xf32>
    %29 = arith.truncf %28 : vector<8x128xf32> to vector<8x128xbf16>
    %c0_16 = arith.constant 0 : index
    %c0_17 = arith.constant 0 : index
    %30 = vector.load %arg7[%c0_16, %c0_17] : memref<128x128xbf16, #tpu.memory_space<vmem>>, vector<128x128xbf16>
    %cst_18 = arith.constant dense<0.000000e+00> : vector<8x128xf32>
    %31 = tpu.matmul %29, %30, %cst_18 {dimension_numbers = #tpu.dot_dimension_numbers<[1], [0], [0], [1], [0, 0, 1, 1], [], []>} : vector<8x128xbf16>, vector<128x128xbf16>, vector<8x128xf32> -> vector<8x128xf32>
    %c0_19 = arith.constant 0 : index
    %c0_20 = arith.constant 0 : index
    %32 = vector.load %arg8[%c0_19, %c0_20] : memref<1x128xf32, #tpu.memory_space<vmem>>, vector<1x128xf32>
    %33 = vector.broadcast %32 : vector<1x128xf32> to vector<8x128xf32>
    %34 = arith.addf %31, %33 : vector<8x128xf32>
    %c0_21 = arith.constant 0 : index
    %c0_22 = arith.constant 0 : index
    %c0_23 = arith.constant 0 : index
    %35 = vector.load %arg10[%c0_21, %c0_22, %c0_23] : memref<1x8x128xf32, #tpu.memory_space<vmem>>, vector<1x8x128xf32>
    %36 = vector.shape_cast %35 : vector<1x8x128xf32> to vector<8x128xf32>
    %37 = vector.shape_cast %28 : vector<8x128xf32> to vector<1x8x128xf32>
    tpu.vector_store %arg10[%c0_21, %c0_22, %c0_23], %37 {strides = array<i32>} : memref<1x8x128xf32, #tpu.memory_space<vmem>>, vector<1x8x128xf32>,
    %c0_24 = arith.constant 0 : index
    %c0_25 = arith.constant 0 : index
    %c0_26 = arith.constant 0 : index
    %38 = vector.load %arg9[%c0_24, %c0_25, %c0_26] : memref<1x8x128xf32, #tpu.memory_space<vmem>>, vector<1x8x128xf32>
    %39 = vector.shape_cast %38 : vector<1x8x128xf32> to vector<8x128xf32>
    %40 = vector.shape_cast %34 : vector<8x128xf32> to vector<1x8x128xf32>
    tpu.vector_store %arg9[%c0_24, %c0_25, %c0_26], %40 {strides = array<i32>} : memref<1x8x128xf32, #tpu.memory_space<vmem>>, vector<1x8x128xf32>,
    return
  }
  func.func @transform_0(%arg0: i32) -> (i32, i32, i32) {
    %c0_i32 = arith.constant 0 : i32
    %c0_i32_0 = arith.constant 0 : i32
    %c0_i32_1 = arith.constant 0 : i32
    return %arg0, %c0_i32, %c0_i32_0 : i32, i32, i32
  }
  func.func @transform_1(%arg0: i32) -> (i32, i32) {
    %c0_i32 = arith.constant 0 : i32
    %c0_i32_0 = arith.constant 0 : i32
    %c0_i32_1 = arith.constant 0 : i32
    return %c0_i32, %c0_i32_0 : i32, i32
  }
  func.func @transform_2(%arg0: i32) -> (i32, i32) {
    %c0_i32 = arith.constant 0 : i32
    %c0_i32_0 = arith.constant 0 : i32
    %c0_i32_1 = arith.constant 0 : i32
    return %c0_i32, %c0_i32_0 : i32, i32
  }
  func.func @transform_3(%arg0: i32) -> (i32, i32) {
    %c0_i32 = arith.constant 0 : i32
    %c0_i32_0 = arith.constant 0 : i32
    %c0_i32_1 = arith.constant 0 : i32
    return %c0_i32, %c0_i32_0 : i32, i32
  }
  func.func @transform_4(%arg0: i32) -> (i32, i32) {
    %c0_i32 = arith.constant 0 : i32
    %c0_i32_0 = arith.constant 0 : i32
    %c0_i32_1 = arith.constant 0 : i32
    return %c0_i32, %c0_i32_0 : i32, i32
  }
  func.func @transform_5(%arg0: i32) -> (i32, i32) {
    %c0_i32 = arith.constant 0 : i32
    %c0_i32_0 = arith.constant 0 : i32
    %c0_i32_1 = arith.constant 0 : i32
    return %c0_i32, %c0_i32_0 : i32, i32
  }
  func.func @transform_6(%arg0: i32) -> (i32, i32) {
    %c0_i32 = arith.constant 0 : i32
    %c0_i32_0 = arith.constant 0 : i32
    %c0_i32_1 = arith.constant 0 : i32
    return %c0_i32, %c0_i32_0 : i32, i32
  }
  func.func @transform_7(%arg0: i32) -> (i32, i32) {
    %c0_i32 = arith.constant 0 : i32
    %c0_i32_0 = arith.constant 0 : i32
    %c0_i32_1 = arith.constant 0 : i32
    return %c0_i32, %c0_i32_0 : i32, i32
  }
  func.func @transform_8(%arg0: i32) -> (i32, i32, i32) {
    %c0_i32 = arith.constant 0 : i32
    %c0_i32_0 = arith.constant 0 : i32
    %c0_i32_1 = arith.constant 0 : i32
    return %arg0, %c0_i32, %c0_i32_0 : i32, i32, i32
  }
  func.func @transform_9(%arg0: i32) -> (i32, i32, i32) {
    %c0_i32 = arith.constant 0 : i32
    %c0_i32_0 = arith.constant 0 : i32
    %c0_i32_1 = arith.constant 0 : i32
    return %arg0, %c0_i32, %c0_i32_0 : i32, i32, i32
  }
}

</mosaic_0001>

<bundles_post_ra>
// kernel: basenet_forward.1
= control target key start
LH: loop header
LB: loop body
LE: loop exit
PB: predicated region body
PF: predicated region fallthrough
CT: control target
= control target key end

     0   :  { %s1932_s30 = smov 0   ;;  %s2637_s0 = inlined_call_operand.vmem [shape: bf16[2,360,4], index: 0, kind: input, shape index: {}]   ;;  %s2638_s1 = inlined_call_operand.vmem [shape: f32[1,288], index: 1, kind: input, shape index: {}]   ;;  %s2639_s2 = inlined_call_operand.vmem [shape: bf16[36,128], index: 2, kind: input, shape index: {}]   ;;  %s2640_s3 = inlined_call_operand.vmem [shape: f32[1,128], index: 3, kind: input, shape index: {}]   ;;  %s2641_s4 = inlined_call_operand.vmem [shape: bf16[128,128], index: 4, kind: input, shape index: {}]   ;;  %s2642_s5 = inlined_call_operand.vmem [shape: f32[1,128], index: 5, kind: input, shape index: {}]   ;;  %s2643_s6 = inlined_call_operand.vmem [shape: bf16[128,128], index: 6, kind: input, shape index: {}]   ;;  %s2644_s7 = inlined_call_operand.vmem [shape: f32[1,128], index: 7, kind: input, shape index: {}]   ;;  %s2645_s8 = inlined_call_operand.vmem [shape: f32[2,8,128], index: 8, kind: output, shape index: {0}]   ;;  %s2646_s9 = inlined_call_operand.vmem [shape: f32[2,8,128], index: 9, kind: output, shape index: {1}]  }
   0x1 LB: > { %s1629_s10 = sadd.s32 4294967295, %s1876_s30   ;;  %p1633_p0 = scmp.ge.s32.totalorder %s1876_s30, 1  ;;  %s1876_s30 = sphi %s1932_s30, %s20_s30  }
   0x2   : > { %p290_p1 = scmp.lt.s32.totalorder %s1876_s30, 3 }
   0x4   : > { %p291_p2 = pnand %p1633_p0, %p290_p1 }
   0x5   : > { %p329_p3 = scmp.lt.s32.totalorder (!%p291_p2), %s1629_s10, 1  ;;  %s1878_s15 = smov (!%p291_p2), 8  }
   0x6   : > { %294 = sbr.rel (%p291_p2) target bundleno = 1026 (0x402), region = 52  ;;  %s1879_s16 = smov (!%p291_p2), 4  }
   0x7   : > { %s1880_s17 = smov (!%p291_p2), 12   ;;  %s1881_s18 = smov (!%p291_p2), 24  }
   0xb   : > { %s2648_s10 = smov (!%p329_p3, %s1629_s10), 1  ;;  %vm697_vm0 = vcmask 1046528   ;;  %vm487_vm1 = vsmask.f32 7424  ;;  %vm781_vm2 = vcmask 31744   ;;  %vm824_vm3 = vcmask 64512  }
   0xc   : > { %s1854_s11 = smul.u32 180, %s2648_s10  ;;  %vm960_vm4 = vcmask 1045504   ;;  %vm1169_vm5 = vcmask 1041408   ;;  %vm1034_vm6 = vcmask 97280   ;;  %vm1071_vm7 = vcmask 195584   ;;  %s1635_s25 = sshll.u32 %s2648_s10, 3 }
   0xd   : > { %vm1132_vm8 = vcmask 293888   ;;  %vm1315_vm9 = vcmask 261120   ;;  %s341_s28 = scalar_lea.vmem %s2646_s9, %s1635_s25 }
   0xe   : > { %s1946_s14 = scalar_lea.vmem %s2637_s0, %s1854_s11 }
   0xf   : > { %v1949_v0 = vld [vmem:[%s1946_s14 + $0x8] sm:$0xff]  ;;  %v1952_v1 = vld [vmem:[%s1946_s14 + $0x10] sm:$0xff]  ;;  %v1955_v2 = vld [vmem:[%s1946_s14 + $0x18] sm:$0xff] }
  0x10   : > { %v1958_v3 = vld [vmem:[%s1946_s14 + $0x20] sm:$0xff]  ;;  %v699_v5 = vrot.slane %v1949_v0, 1  ;;  %v701_v6 = vrot.slane %v1952_v1, 1  ;;  %v496_v7 = vshll.u32 %v1949_v0, 16  ;;  %v500_v8 = vshrl.u32 %v1949_v0, 16  ;;  %v1978_v17 = vld [vmem:[%s1946_s14 + $0x48] sm:$0xff] }
  0x11   : > { %v1961_v4 = vld [vmem:[%s1946_s14 + $0x40] sm:$0xff]  ;;  %v504_v9 = vshll.u32 %v1952_v1, 16  ;;  %v512_v10 = vshll.u32 %v1955_v2, 16  ;;  %v516_v11 = vshrl.u32 %v1955_v2, 16  ;;  %v520_v12 = vshll.u32 %v1958_v3, 16  ;;  %v1990_v27 = vld [vmem:[%s1946_s14 + $0x28] sm:$0xff] }
  0x12   : > { %v702_v13 = vsel %vm697_vm0, %v699_v5, %v701_v6  ;;  %v1974_v14 = vrot.slane %v496_v7, 1  ;;  %v552_v18 = vshll.u32 %v1961_v4, 16  ;;  %v508_v21 = vshrl.u32 %v1952_v1, 16  ;;  %v1993_v28 = vld [vmem:[%s1946_s14 + $0x50] sm:$0xff]  ;;  %v2006_v39 = vld [vmem:[%s1946_s14 + $0x58] sm:$0xff]  ;;  %v2028_v59 = vld [vmem:[%s1946_s14 + $0x60] sm:$0xff] }
  0x13   : > { %741 = vrot.lane.b32.xlu1 %v702_v13, %s1878_s15  ;;  %v506_v15 = vrot.slane %v504_v9, 1  ;;  %v514_v16 = vrot.slane %v512_v10, 1  ;;  %v522_v20 = vrot.slane %v520_v12, 1  ;;  %v556_v25 = vshrl.u32 %v1961_v4, 16  ;;  %v2037_v7 = vld [vmem:[%s1946_s14 + $0x30] sm:$0xff] }
  0x14   : > { %v502_v19 = vor.u32 %v500_v8, %v1974_v14  ;;  %v1985_v24 = vrot.slane %v552_v18, 1  ;;  %v560_v26 = vshll.u32 %v1978_v17, 16  ;;  %v703_v31 = vrot.slane %v1955_v2, 1 }
  0x15   : > { %v518_v22 = vor.u32 %v516_v11, %v514_v16  ;;  %v510_v30 = vor.u32 %v508_v21, %v506_v15  ;;  %v524_v32 = vshrl.u32 %v1958_v3, 16  ;;  %v528_v36 = vshll.u32 %v1990_v27, 16 }
  0x16   : > { %v507_v23 = vsel %vm487_vm1, %v502_v19, %v506_v15  ;;  %v704_v33 = vsel %vm697_vm0, %v701_v6, %v703_v31  ;;  %v558_v34 = vor.u32 %v556_v25, %v1985_v24  ;;  %v562_v35 = vrot.slane %v560_v26, 1  ;;  %v2048_v15 = vld [vmem:[%s1946_s14] sm:$0xff]  ;;  %v2058_v25 = vld [vmem:[%s1946_s14 + $0x38] sm:$0xff] }
  0x17   : > { %657 = vrot.lane.b32.xlu0 %v507_v23, %s1879_s16  ;;  %v523_v29 = vsel %vm487_vm1, %v518_v22, %v522_v20  ;;  %v568_v37 = vshll.u32 %v1993_v28, 16  ;;  %743 = vrot.lane.b32.xlu2 %v704_v33, %s1878_s15  ;;  %v515_v38 = vsel %vm487_vm1, %v510_v30, %v514_v16  ;;  %v705_v40 = vrot.slane %v1958_v3, 1 }
  0x18   : > { %v563_v41 = vsel %vm487_vm1, %v558_v34, %v562_v35  ;;  %v526_v42 = vor.u32 %v524_v32, %v522_v20  ;;  %v530_v43 = vrot.slane %v528_v36, 1  ;;  %v572_v45 = vshrl.u32 %v1993_v28, 16  ;;  %v2071_v36 = vld [vmem:[%s1946_s14 + $0x68] sm:$0xff] }
  0x19   : > { %v570_v44 = vrot.slane %v568_v37, 1  ;;  %v576_v46 = vshll.u32 %v2006_v39, 16  ;;  %v706_v47 = vsel %vm697_vm0, %v703_v31, %v705_v40  ;;  %v564_v48 = vshrl.u32 %v1978_v17, 16 }
  0x1a   : > { %v531_v49 = vsel %vm487_vm1, %v526_v42, %v530_v43  ;;  %v707_v54 = vrot.slane %v1990_v27, 1  ;;  %v717_v57 = vrot.slane %v1993_v28, 1  ;;  %v719_v58 = vrot.slane %v2006_v39, 1 }
  0x1b   : > { %661 = vrot.lane.b32.xlu1 %v523_v29, %s1879_s16  ;;  %v574_v50 = vor.u32 %v572_v45, %v570_v44  ;;  %v578_v51 = vrot.slane %v576_v46, 1  ;;  %v566_v52 = vor.u32 %v564_v48, %v562_v35  ;;  %v713_v60 = vrot.slane %v1961_v4, 1 }
  0x1c   : > { %v708_v56 = vsel %vm697_vm0, %v705_v40, %v707_v54  ;;  %v715_v61 = vrot.slane %v1978_v17, 1  ;;  %v580_v62 = vshrl.u32 %v2006_v39, 16  ;;  %v720_v63 = vsel %vm697_vm0, %v717_v57, %v719_v58 }
  0x1d   : > { %v579_v53 = vsel %vm487_vm1, %v574_v50, %v578_v51  ;;  %v571_v55 = vsel %vm487_vm1, %v566_v52, %v570_v44  ;;  %v584_v6 = vshll.u32 %v2028_v59, 16  ;;  %v532_v9 = vshrl.u32 %v1990_v27, 16 }
  0x1e   : > { %v716_v8 = vsel %vm697_vm0, %v713_v60, %v715_v61  ;;  %v536_v10 = vshll.u32 %v2037_v7, 16  ;;  %v718_v11 = vsel %vm697_vm0, %v715_v61, %v717_v57  ;;  %v582_v12 = vor.u32 %v580_v62, %v578_v51  ;;  %v2092_v51 = vld [vmem:[%s1946_s14 + $0x80] sm:$0xff]  ;;  %v2103_v61 = vld [vmem:[%s1946_s14 + $0x88] sm:$0xff] }
  0x1f   : > { %659 = vrot.lane.b32.xlu0 %v515_v38, %s1879_s16  ;;  %745 = vrot.lane.b32.xlu2 %v706_v47, %s1878_s15  ;;  %v586_v13 = vrot.slane %v584_v6, 1  ;;  %v534_v16 = vor.u32 %v532_v9, %v530_v43  ;;  %v709_v19 = vrot.slane %v2037_v7, 1  ;;  %v491_v21 = vshll.u32 %v2048_v15, 16  ;;  %v2075_v38 = vld [vmem:[%s1946_s14 + $0x70] sm:$0xff]  ;;  %v2081_v43 = vld [vmem:[%s1946_s14 + $0x78] sm:$0xff] }
  0x20   : > { %v538_v18 = vrot.slane %v536_v10, 1  ;;  %v698_v26 = vrot.slane %v2048_v15, 1  ;;  %v489_v29 = vshrl.u32 %v2048_v15, 16  ;;  %v721_v31 = vrot.slane %v2028_v59, 1 }
  0x21   : > { %v587_v20 = vsel %vm487_vm1, %v582_v12, %v586_v13  ;;  %v710_v23 = vsel %vm697_vm0, %v707_v54, %v709_v19  ;;  %v493_v30 = vrot.slane %v491_v21, 1  ;;  %v540_v32 = vshrl.u32 %v2037_v7, 16 }
  0x22   : > { %v539_v22 = vsel %vm487_vm1, %v534_v16, %v538_v18  ;;  %v544_v33 = vshll.u32 %v2058_v25, 16  ;;  %v700_v34 = vsel %vm697_vm0, %v698_v26, %v699_v5  ;;  %v722_v37 = vsel %vm697_vm0, %v719_v58, %v721_v31 }
  0x23   : > { %671 = vrot.lane.b32.xlu1 %v563_v41, %s1879_s16  ;;  %v494_v35 = vor.u32 %v493_v30, %v489_v29  ;;  %v542_v40 = vor.u32 %v540_v32, %v538_v18  ;;  %v588_v42 = vshrl.u32 %v2028_v59, 16  ;;  %v592_v44 = vshll.u32 %v2071_v36, 16 }
  0x24   : > { %v546_v41 = vrot.slane %v544_v33, 1  ;;  %v711_v45 = vrot.slane %v2058_v25, 1  ;;  %v600_v46 = vshll.u32 %v2075_v38, 16  ;;  %v723_v54 = vrot.slane %v2071_v36, 1 }
  0x25   : > { %v499_v5 = vsel %vm487_vm1, %v494_v35, %v1974_v14  ;;  %v590_v48 = vor.u32 %v588_v42, %v586_v13  ;;  %v594_v50 = vrot.slane %v592_v44, 1  ;;  %v616_v58 = vshll.u32 %v2092_v51, 16 }
  0x26   : > { %v547_v47 = vsel %vm487_vm1, %v542_v40, %v546_v41  ;;  %v712_v52 = vsel %vm697_vm0, %v709_v19, %v711_v45  ;;  %v602_v14 = vrot.slane %v600_v46, 1  ;;  %v620_v9 = vshrl.u32 %v2092_v51, 16  ;;  %v2145_v46 = vld [vmem:[%s1946_s14 + $0x98] sm:$0xff] }
  0x27   : > { %663 = vrot.lane.b32.xlu0 %v531_v49, %s1879_s16  ;;  %673 = vrot.lane.b32.xlu2 %v571_v55, %s1879_s16  ;;  %v608_v49 = vshll.u32 %v2081_v43, 16  ;;  %v595_v57 = vsel %vm487_vm1, %v590_v48, %v594_v50  ;;  %v624_v10 = vshll.u32 %v2103_v61, 16  ;;  %v727_v18 = vrot.slane %v2081_v43, 1 }
  0x28   : > { %v725_v19 = vrot.slane %v2075_v38, 1  ;;  %v729_v21 = vrot.slane %v2092_v51, 1  ;;  %v731_v29 = vrot.slane %v2103_v61, 1  ;;  %v596_v33 = vshrl.u32 %v2071_v36, 16 }
  0x29   : > { %v610_v55 = vrot.slane %v608_v49, 1  ;;  %v626_v16 = vrot.slane %v624_v10, 1  ;;  %v714_v40 = vsel %vm697_vm0, %v711_v45, %v713_v60  ;;  %v640_v60 = vshll.u32 %v2145_v46, 16 }
  0x2a   : > { %v730_v26 = vsel %vm697_vm0, %v727_v18, %v729_v21  ;;  %v598_v35 = vor.u32 %v596_v33, %v594_v50 }
  0x2b   : > { %675 = vrot.lane.b32.xlu1 %v579_v53, %s1879_s16  ;;  %v604_v53 = vshrl.u32 %v2075_v38, 16  ;;  %v2151_v49 = vrot.slane %v640_v60, 1 }
  0x2d   : > { %v606_v62 = vor.u32 %v604_v53, %v602_v14 }
  0x2f   : > { %747 = vrot.lane.b32.xlu0 %v708_v56, %s1878_s15  ;;  %755 = vrot.lane.b32.xlu2 %v716_v8, %s1878_s15  ;;  %v612_v56 = vshrl.u32 %v2081_v43, 16  ;;  %v618_v8 = vrot.slane %v616_v58, 1 }
  0x31   : > { %v614_v6 = vor.u32 %v612_v56, %v610_v55  ;;  %v622_v13 = vor.u32 %v620_v9, %v618_v8 }
  0x33   : > { %759 = vrot.lane.b32.xlu1 %v720_v63, %s1878_s15  ;;  %v724_v63 = vsel %vm697_vm0, %v721_v31, %v723_v54  ;;  %v619_v12 = vsel %vm487_vm1, %v614_v6, %v618_v8  ;;  %v732_v31 = vsel %vm697_vm0, %v729_v21, %v731_v29 }
  0x37   : > { %757 = vrot.lane.b32.xlu0 %v718_v11, %s1878_s15  ;;  %665 = vrot.lane.b32.xlu2 %v539_v22, %s1879_s16  ;;  %v611_v11 = vsel %vm487_vm1, %v606_v62, %v610_v55  ;;  %v728_v22 = vsel %vm697_vm0, %v725_v19, %v727_v18 }
  0x3b   : > { %677 = vrot.lane.b32.xlu1 %v587_v20, %s1879_s16  ;;  %v627_v20 = vsel %vm487_vm1, %v622_v13, %v626_v16 }
  0x3f   : > { %749 = vrot.lane.b32.xlu0 %v710_v23, %s1878_s15  ;;  %761 = vrot.lane.b32.xlu2 %v722_v37, %s1878_s15  ;;  %v548_v23 = vshrl.u32 %v2058_v25, 16  ;;  %v2133_v37 = vld [vmem:[%s1946_s14 + $0x90] sm:$0xff] }
  0x40   : > { %v632_v42 = vshll.u32 %v2133_v37, 16  ;;  %v636_v48 = vshrl.u32 %v2133_v37, 16  ;;  %v733_v18 = vrot.slane %v2133_v37, 1 }
  0x41   : > { %v550_v30 = vor.u32 %v548_v23, %v546_v41  ;;  %v628_v41 = vshrl.u32 %v2103_v61, 16 }
  0x42   : > { %v634_v44 = vrot.slane %v632_v42, 1  ;;  %v734_v21 = vsel %vm697_vm0, %v731_v29, %v733_v18 }
  0x43   : > { %739 = vrot.lane.b32.xlu1 %v700_v34, %s1878_s15  ;;  %v555_v32 = vsel %vm487_vm1, %v550_v30, %v1985_v24  ;;  %v726_v34 = vsel %vm697_vm0, %v723_v54, %v725_v19  ;;  %v603_v24 = vsel %vm487_vm1, %v598_v35, %v602_v14 }
  0x44   : > { %v638_v45 = vor.u32 %v636_v48, %v634_v44 }
  0x46   : > { %v643_v50 = vsel %vm487_vm1, %v638_v45, %v2151_v49 }
  0x47   : > { %655 = vrot.lane.b32.xlu0 %v499_v5, %s1879_s16  ;;  %751 = vrot.lane.b32.xlu2 %v712_v52, %s1878_s15  ;;  %v630_v5 = vor.u32 %v628_v41, %v626_v16  ;;  %v735_v41 = vrot.slane %v2145_v46, 1 }
  0x49   : > { %v736_v45 = vsel %vm697_vm0, %v733_v18, %v735_v41 }
  0x4b   : > { %667 = vrot.lane.b32.xlu1 %v547_v47, %s1879_s16  ;;  %v635_v47 = vsel %vm487_vm1, %v630_v5, %v634_v44 }
  0x4f   : > { %679 = vrot.lane.b32.xlu0 %v595_v57, %s1879_s16  ;;  %683 = vrot.lane.b32.xlu2 %v611_v11, %s1879_s16 }
  0x53   : > { %763 = vrot.lane.b32.xlu1 %v724_v63, %s1878_s15 }
  0x57   : > { %685 = vrot.lane.b32.xlu0 %v619_v12, %s1879_s16  ;;  %767 = vrot.lane.b32.xlu2 %v728_v22, %s1878_s15 }
  0x5b   : > { %687 = vrot.lane.b32.xlu1 %v627_v20, %s1879_s16 }
  0x5f   : > { %769 = vrot.lane.b32.xlu0 %v730_v26, %s1878_s15  ;;  %669 = vrot.lane.b32.xlu2 %v555_v32, %s1879_s16 }
  0x63   : > { %771 = vrot.lane.b32.xlu1 %v732_v31, %s1878_s15 }
  0x67   : > { %765 = vrot.lane.b32.xlu0 %v726_v34, %s1878_s15  ;;  %681 = vrot.lane.b32.xlu2 %v603_v24, %s1879_s16 }
  0x6b   : > { %753 = vrot.lane.b32.xlu1 %v714_v40, %s1878_s15 }
  0x71   : > { %v744_v52 = vpop.permute.xlu2 %743 }
  0x73   : > { %689 = vrot.lane.b32.xlu1 %v635_v47, %s1879_s16 }
  0x79   : > { %v746_v14 = vpop.permute.xlu2 %745 }
  0x7b   : > { %691 = vrot.lane.b32.xlu1 %v643_v50, %s1879_s16 }
  0x81   : > { %v674_v58 = vpop.permute.xlu2 %673 }
  0x85   : > { %v742_v53 = vpop.permute.xlu1 %741 }
  0x89   : > { %v658_v54 = vpop.permute.xlu0 %657 }
  0x8a   : > { %v785_v56 = vsel %vm781_vm2, %v1949_v0, %v658_v54 }
  0x8b   : > { %v2164_v63 = vsel %vm824_vm3, %v785_v56, %v742_v53 }
  0x8c   : > { %v886_v0 = vrot.slane %v2164_v63, 1 }
  0x8d   : > { %v662_v55 = vpop.permute.xlu1 %661 }
  0x8e   : > { %v789_v57 = vsel %vm781_vm2, %v1955_v2, %v662_v55 }
  0x8f   : > { %v2161_v62 = vsel %vm824_vm3, %v789_v57, %v746_v14 }
  0x90   : > { %v962_v8 = vrot.slane %v2161_v62, 2  ;;  %v889_v20 = vrot.slane %v2161_v62, 1 }
  0x91   : > { %v660_v6 = vpop.permute.xlu0 %659 }
  0x92   : > { %v787_v9 = vsel %vm781_vm2, %v1952_v1, %v660_v6  ;;  %v756_v1 = vpop.permute.xlu2 %755 }
  0x93   : > { %v2170_v10 = vsel %vm824_vm3, %v787_v9, %v744_v52 }
  0x94   : > { %v887_v2 = vrot.slane %v2170_v10, 1  ;;  %v961_v11 = vrot.slane %v2170_v10, 2 }
  0x95   : > { %v672_v12 = vpop.permute.xlu1 %671 }
  0x96   : > { %v888_v13 = vsel %vm697_vm0, %v886_v0, %v887_v2  ;;  %v963_v16 = vsel %vm960_vm4, %v961_v11, %v962_v8  ;;  %v890_v23 = vsel %vm697_vm0, %v887_v2, %v889_v20  ;;  %v799_v34 = vsel %vm781_vm2, %v1961_v4, %v672_v12 }
  0x97   : > { %923 = vrot.lane.b32.xlu2 %v888_v13, %s1880_s17  ;;  %998 = vrot.lane.b32.xlu0 %v963_v16, %s1881_s18 }
  0x99   : > { %v664_v19 = vpop.permute.xlu0 %663 }
  0x9a   : > { %v791_v26 = vsel %vm781_vm2, %v1958_v3, %v664_v19  ;;  %v666_v32 = vpop.permute.xlu2 %665  ;;  %v2201_v3 = vsel %vm824_vm3, %v799_v34, %v756_v1 }
  0x9b   : > { %v899_v44 = vrot.slane %v2201_v3, 1  ;;  %v793_v14 = vsel %vm781_vm2, %v1990_v27, %v666_v32 }
  0x9d   : > { %v676_v22 = vpop.permute.xlu1 %675 }
  0x9e   : > { %v803_v33 = vsel %vm781_vm2, %v1993_v28, %v676_v22  ;;  %v801_v28 = vsel %vm781_vm2, %v1978_v17, %v674_v58 }
  0x9f   : > { %773 = vrot.lane.b32.xlu2 %v734_v21, %s1878_s15  ;;  %925 = vrot.lane.b32.xlu0 %v890_v23, %s1880_s17  ;;  %v383_v23 = vld [vmem:[%s1946_s14 + $0xa0] sm:$0xf]  ;;  %s337_s14 = scalar_lea.vmem %s2645_s8, %s1635_s25 }
  0xa0   : > { %v465_v32 = vunpack.c.l.b16 %v383_v23 }
  0xa1   : > { %v748_v30 = vpop.permute.xlu0 %747 }
  0xa2   : > { %v2188_v31 = vsel %vm824_vm3, %v791_v26, %v748_v30  ;;  %v762_v60 = vpop.permute.xlu2 %761 }
  0xa3   : > { %v964_v29 = vrot.slane %v2188_v31, 2  ;;  %v891_v53 = vrot.slane %v2188_v31, 1 }
  0xa5   : > { %v760_v35 = vpop.permute.xlu1 %759  ;;  %v965_v40 = vsel %vm960_vm4, %v962_v8, %v964_v29  ;;  %v892_v27 = vsel %vm697_vm0, %v889_v20, %v891_v53 }
  0xa6   : > { %v2197_v24 = vsel %vm824_vm3, %v803_v33, %v760_v35 }
  0xa7   : > { %1000 = vrot.lane.b32.xlu2 %v965_v40, %s1881_s18  ;;  %v976_v42 = vrot.slane %v2197_v24, 2  ;;  %v903_v55 = vrot.slane %v2197_v24, 1  ;;  %v2274_v40 = vpack.c.b16 %v465_v32, %v465_v32 }
  0xa9   : > { %v758_v5 = vpop.permute.xlu0 %757 }
  0xaa   : > { %v2208_v4 = vsel %vm824_vm3, %v801_v28, %v758_v5  ;;  %v752_v6 = vpop.permute.xlu2 %751 }
  0xab   : > { %v901_v47 = vrot.slane %v2208_v4, 1  ;;  %v974_v48 = vrot.slane %v2208_v4, 2 }
  0xad   : > { %v678_v50 = vpop.permute.xlu1 %677  ;;  %v977_v17 = vsel %vm960_vm4, %v974_v48, %v976_v42  ;;  %v902_v52 = vsel %vm697_vm0, %v899_v44, %v901_v47  ;;  %v904_v2 = vsel %vm697_vm0, %v901_v47, %v903_v55  ;;  %v644_v47 = vshrl.u32 %v2145_v46, 16 }
  0xae   : > { %1012 = vrot.lane.b32.xlu1 %v977_v17, %s1881_s18  ;;  %937 = vrot.lane.b32.xlu0 %v902_v52, %s1880_s17  ;;  %v805_v57 = vsel %vm781_vm2, %v2006_v39, %v678_v50 }
  0xaf   : > { %775 = vrot.lane.b32.xlu2 %v736_v45, %s1878_s15  ;;  %v2238_v0 = vsel %vm824_vm3, %v805_v57, %v762_v60  ;;  %v648_v60 = vshll.u32 %v2274_v40, 16  ;;  %v646_v17 = vor.u32 %v644_v47, %v2151_v49  ;;  %v1830_v47 = vld [vmem:[%s2639_s2] sm:$0xff] }
  0xb0   : > { %v978_v39 = vrot.slane %v2238_v0, 2  ;;  %v905_v12 = vrot.slane %v2238_v0, 1 }
  0xb1   : > { %v750_v54 = vpop.permute.xlu0 %749  ;;  %v650_v52 = vrot.slane %v648_v60, 1 }
  0xb2   : > { %v2230_v56 = vsel %vm824_vm3, %v793_v14, %v750_v54  ;;  %v979_v18 = vsel %vm960_vm4, %v976_v42, %v978_v39  ;;  %v906_v20 = vsel %vm697_vm0, %v903_v55, %v905_v12  ;;  %v684_v21 = vpop.permute.xlu2 %683 }
  0xb3   : > { %v966_v58 = vrot.slane %v2230_v56, 2  ;;  %v893_v26 = vrot.slane %v2230_v56, 1  ;;  %v651_v49 = vsel %vm487_vm1, %v646_v17, %v650_v52 }
  0xb5   : > { %v740_v8 = vpop.permute.xlu1 %739  ;;  %v967_v9 = vsel %vm960_vm4, %v964_v29, %v966_v58  ;;  %v894_v34 = vsel %vm697_vm0, %v891_v53, %v893_v26 }
  0xb6   : > { %1002 = vrot.lane.b32.xlu1 %v967_v9, %s1881_s18  ;;  %927 = vrot.lane.b32.xlu0 %v892_v27, %s1880_s17 }
  0xb7   : > { %939 = vrot.lane.b32.xlu2 %v904_v2, %s1880_s17  ;;  %v737_v2 = vrot.slane %v2274_v40, 1 }
  0xb9   : > { %v656_v11 = vpop.permute.xlu0 %655 }
  0xba   : > { %v783_v13 = vsel %vm781_vm2, %v2048_v15, %v656_v11  ;;  %v768_v28 = vpop.permute.xlu2 %767  ;;  %v1112_v11 = vld [vmem:[%s2639_s2 + $0x10] sm:$0x3] }
  0xbb   : > { %v2249_v16 = vsel %vm824_vm3, %v783_v13, %v740_v8 }
  0xbd   : > { %v668_v1 = vpop.permute.xlu1 %667 }
  0xbe   : > { %v795_v19 = vsel %vm781_vm2, %v2037_v7, %v668_v1  ;;  %1014 = vrot.lane.b32.xlu0 %v979_v18, %s1881_s18  ;;  %v738_v1 = vsel %vm697_vm0, %v735_v41, %v737_v2  ;;  %v1126_v18 = vunpack.c.l.b16 %v1112_v11 }
  0xbf   : > { %v2259_v22 = vsel %vm824_vm3, %v795_v19, %v752_v6  ;;  %941 = vrot.lane.b32.xlu2 %v906_v20, %s1880_s17 }
  0xc0   : > { %v968_v15 = vrot.slane %v2259_v22, 2  ;;  %v1129_v23 = vpack.c.b16 %v1126_v18, %v1126_v18 }
  0xc1   : > { %v680_v30 = vpop.permute.xlu0 %679 }
  0xc2   : > { %v969_v7 = vsel %vm960_vm4, %v966_v58, %v968_v15  ;;  %v807_v33 = vsel %vm781_vm2, %v2028_v59, %v680_v30  ;;  %v811_v59 = vsel %vm781_vm2, %v2075_v38, %v684_v21  ;;  %v670_v55 = vpop.permute.xlu2 %669  ;;  %v895_v21 = vrot.slane %v2259_v22, 1 }
  0xc3   : > { %1004 = vrot.lane.b32.xlu1 %v969_v7, %s1881_s18  ;;  %v2287_v14 = vsel %vm824_vm3, %v811_v59, %v768_v28  ;;  %v797_v13 = vsel %vm781_vm2, %v2058_v25, %v670_v55 }
  0xc4   : > { %v911_v57 = vrot.slane %v2287_v14, 1 }
  0xc5   : > { %v764_v29 = vpop.permute.xlu1 %763 }
  0xc6   : > { %v2271_v35 = vsel %vm824_vm3, %v807_v33, %v764_v29  ;;  %929 = vrot.lane.b32.xlu0 %v894_v34, %s1880_s17  ;;  %v1171_v33 = vsel %vm1169_vm5, %v1129_v23, 0  ;;  %v896_v34 = vsel %vm697_vm0, %v893_v26, %v895_v21 }
  0xc7   : > { %v980_v42 = vrot.slane %v2271_v35, 2  ;;  %1178 = vmatpush.bf16.msra.mxu0 %v1171_v33  ;;  %1848 = vmatpush.bf16.msra.mxu2 %v1171_v33  ;;  %v907_v41 = vrot.slane %v2271_v35, 1 }
  0xc8   : > { %1849 = vmatpush.bf16.msra.mxu3 %v1171_v33 }
  0xc9   : > { %v686_v5 = vpop.permute.xlu0 %685  ;;  %v981_v50 = vsel %vm960_vm4, %v978_v39, %v980_v42  ;;  %v908_v26 = vsel %vm697_vm0, %v905_v12, %v907_v41  ;;  %v652_v12 = vshrl.u32 %v2274_v40, 16 }
  0xca   : > { %v813_v53 = vsel %vm781_vm2, %v2081_v43, %v686_v5  ;;  %v682_v19 = vpop.permute.xlu2 %681 }
  0xcb   : > { %v809_v7 = vsel %vm781_vm2, %v2071_v36, %v682_v19  ;;  %v1831_v36 = vld [vmem:[%s2639_s2 + $0x8] sm:$0xff] }
  0xcc   : > { %1179 = vmatpush.bf16.msra.mxu0 %v1831_v36  ;;  %1850 = vmatpush.bf16.msra.mxu2 %v1831_v36 }
  0xcd   : > { %v688_v45 = vpop.permute.xlu1 %687  ;;  %1851 = vmatpush.bf16.msra.mxu3 %v1831_v36 }
  0xce   : > { %1016 = vrot.lane.b32.xlu0 %v981_v50, %s1881_s18  ;;  %v815_v58 = vsel %vm781_vm2, %v2092_v51, %v688_v45  ;;  %v654_v45 = vor.u32 %v652_v12, %v650_v52 }
  0xd0   : > { %1180 = vmatpush.bf16.msra.mxu0 %v1830_v47  ;;  %1852 = vmatpush.bf16.msra.mxu2 %v1830_v47 }
  0xd1   : > { %v770_v54 = vpop.permute.xlu0 %769  ;;  %1853 = vmatpush.bf16.msra.mxu3 %v1830_v47 }
  0xd2   : > { %v2292_v38 = vsel %vm824_vm3, %v813_v53, %v770_v54  ;;  %v972_v54 = vrot.slane %v2201_v3, 2 }
  0xd3   : > { %v913_v6 = vrot.slane %v2292_v38, 1  ;;  %v986_v27 = vrot.slane %v2292_v38, 2 }
  0xd5   : > { %v772_v8 = vpop.permute.xlu1 %771  ;;  %v914_v9 = vsel %vm697_vm0, %v911_v57, %v913_v6 }
  0xd6   : > { %v2303_v43 = vsel %vm824_vm3, %v815_v58, %v772_v8  ;;  %949 = vrot.lane.b32.xlu1 %v914_v9, %s1880_s17  ;;  %693 = vrot.lane.b32.xlu0 %v651_v49, %s1879_s16 }
  0xd7   : > { %v988_v51 = vrot.slane %v2303_v43, 2  ;;  %v915_v5 = vrot.slane %v2303_v43, 1 }
  0xd9   : > { %v989_v39 = vsel %vm960_vm4, %v986_v27, %v988_v51  ;;  %v766_v25 = vpop.permute.xlu0 %765  ;;  %v916_v60 = vsel %vm697_vm0, %v913_v6, %v915_v5 }
  0xda   : > { %1024 = vrot.lane.b32.xlu2 %v989_v39, %s1881_s18  ;;  %v2334_v28 = vsel %vm824_vm3, %v809_v7, %v766_v25 }
  0xdb   : > { %v909_v53 = vrot.slane %v2334_v28, 1 }
  0xdd   : > { %v754_v20 = vpop.permute.xlu1 %753  ;;  %v910_v6 = vsel %vm697_vm0, %v907_v41, %v909_v53 }
  0xde   : > { %v2324_v30 = vsel %vm824_vm3, %v797_v13, %v754_v20  ;;  %777 = vrot.lane.b32.xlu1 %v738_v1, %s1878_s15  ;;  %v975_v20 = vsel %vm960_vm4, %v972_v54, %v974_v48 }
  0xdf   : > { %v970_v32 = vrot.slane %v2324_v30, 2 }
  0xe1   : > { %v971_v29 = vsel %vm960_vm4, %v968_v15, %v970_v32  ;;  %v982_v15 = vrot.slane %v2334_v28, 2  ;;  %v973_v58 = vsel %vm960_vm4, %v970_v32, %v972_v54 }
  0xe2   : > { %1006 = vrot.lane.b32.xlu0 %v971_v29, %s1881_s18  ;;  %931 = vrot.lane.b32.xlu2 %v896_v34, %s1880_s17  ;;  %v912_v29 = vsel %vm697_vm0, %v909_v53, %v911_v57 }
  0xe3   : > { %v983_v59 = vsel %vm960_vm4, %v980_v42, %v982_v15 }
  0xe5   : > { %v690_v17 = vpop.permute.xlu1 %689 }
  0xe6   : > { %943 = vrot.lane.b32.xlu1 %v908_v26, %s1880_s17  ;;  %v817_v42 = vsel %vm781_vm2, %v2103_v61, %v690_v17  ;;  %v897_v61 = vrot.slane %v2324_v30, 1 }
  0xe8   : > { %v898_v13 = vsel %vm697_vm0, %v895_v21, %v897_v61  ;;  %v900_v41 = vsel %vm697_vm0, %v897_v61, %v899_v44 }
  0xea   : > { %951 = vrot.lane.b32.xlu0 %v916_v60, %s1880_s17  ;;  %1018 = vrot.lane.b32.xlu2 %v983_v59, %s1881_s18 }
  0xed   : > { %v692_v11 = vpop.permute.xlu1 %691 }
  0xee   : > { %v819_v1 = vsel %vm781_vm2, %v2133_v37, %v692_v11  ;;  %v984_v37 = vrot.slane %v2287_v14, 2 }
  0xf1   : > { %v924_v50 = vpop.permute.xlu2 %923 }
  0xf2   : > { %779 = vrot.lane.b32.xlu0 %v737_v2, %s1878_s15  ;;  %695 = vrot.lane.b32.xlu2 %v654_v45, %s1879_s16 }
  0xf9   : > { %v774_v55 = vpop.permute.xlu2 %773 }
  0xfa   : > { %v2366_v52 = vsel %vm824_vm3, %v817_v42, %v774_v55  ;;  %1008 = vrot.lane.b32.xlu2 %v973_v58, %s1881_s18  ;;  %945 = vrot.lane.b32.xlu0 %v910_v6, %s1880_s17 }
  0xfb   : > { %v990_v49 = vrot.slane %v2366_v52, 2  ;;  %v917_v8 = vrot.slane %v2366_v52, 1 }
  0xfd   : > { %v991_v9 = vsel %vm960_vm4, %v988_v51, %v990_v49  ;;  %v918_v39 = vsel %vm697_vm0, %v915_v5, %v917_v8  ;;  %v1036_v51 = vsel %vm1034_vm6, %v2249_v16, %v924_v50  ;;  %v985_v16 = vsel %vm960_vm4, %v982_v15, %v984_v37 }
  0xfe   : > { %1026 = vrot.lane.b32.xlu1 %v991_v9, %s1881_s18  ;;  %v987_v5 = vsel %vm960_vm4, %v984_v37, %v986_v27 }
 0x101   : > { %v1001_v2 = vpop.permute.xlu2 %1000 }
 0x102   : > { %953 = vrot.lane.b32.xlu2 %v918_v39, %s1880_s17 }
 0x106   : > { %933 = vrot.lane.b32.xlu1 %v898_v13, %s1880_s17 }
 0x109   : > { %v776_v18 = vpop.permute.xlu2 %775  ;;  %v999_v19 = vpop.permute.xlu0 %998 }
 0x10a   : > { %v2387_v23 = vsel %vm824_vm3, %v819_v1, %v776_v18  ;;  %1010 = vrot.lane.b32.xlu2 %v975_v20, %s1881_s18  ;;  %v1073_v21 = vsel %vm1071_vm7, %v1036_v51, %v999_v19 }
 0x10b   : > { %v919_v7 = vrot.slane %v2387_v23, 1  ;;  %v992_v25 = vrot.slane %v2387_v23, 2  ;;  %1725 = vmatmul.msk.bf16.vlgmr.msra.gmra.mxu0 %vm1132_vm8, %v1073_v21 }
 0x10d   : > { %v993_v32 = vsel %vm960_vm4, %v990_v49, %v992_v25  ;;  %v920_v48 = vsel %vm697_vm0, %v917_v8, %v919_v7 }
 0x10e   : > { %1020 = vrot.lane.b32.xlu1 %v985_v16, %s1881_s18  ;;  %1028 = vrot.lane.b32.xlu0 %v993_v32, %s1881_s18 }
 0x111   : > { %v926_v33 = vpop.permute.xlu0 %925  ;;  %v940_v27 = vpop.permute.xlu2 %939 }
 0x112   : > { %955 = vrot.lane.b32.xlu2 %v920_v48, %s1880_s17  ;;  %v1038_v34 = vsel %vm1034_vm6, %v2164_v63, %v926_v33  ;;  %v1052_v12 = vsel %vm1034_vm6, %v2201_v3, %v940_v27 }
 0x113   : > { %v1075_v36 = vsel %vm1071_vm7, %v1038_v34, %v1001_v2 }
 0x116   : > { %935 = vrot.lane.b32.xlu1 %v900_v41, %s1880_s17  ;;  %947 = vrot.lane.b32.xlu0 %v912_v29, %s1880_s17 }
 0x119   : > { %v942_v54 = vpop.permute.xlu2 %941 }
 0x11a   : > { %v1054_v42 = vsel %vm1034_vm6, %v2208_v4, %v942_v54 }
 0x11b   : > { %1726 = vmatmul.msk.bf16.gmra.mxu0 %vm1132_vm8, %v1075_v36 }
 0x11e   : > { %1022 = vrot.lane.b32.xlu1 %v987_v5, %s1881_s18 }
 0x120   : > { %v1013_v44 = vpop.permute.xlu1 %1012  ;;  %v938_v15 = vpop.permute.xlu0 %937 }
 0x121   : > { %v1050_v57 = vsel %vm1034_vm6, %v2324_v30, %v938_v15 }
 0x122   : > { %v1087_v26 = vsel %vm1071_vm7, %v1050_v57, %v1013_v44 }
 0x123   : > { %1732 = vmatmul.msk.bf16.vlgmr.msra.gmra.mxu2 %vm1132_vm8, %v1087_v26 }
 0x128   : > { %v1003_v63 = vpop.permute.xlu1 %1002  ;;  %v928_v47 = vpop.permute.xlu0 %927 }
 0x129   : > { %v1040_v60 = vsel %vm1034_vm6, %v2170_v10, %v928_v47 }
 0x12a   : > { %v1077_v59 = vsel %vm1071_vm7, %v1040_v60, %v1003_v63 }
 0x12b   : > { %1727 = vmatmul.msk.bf16.gmra.mxu0 %vm1132_vm8, %v1077_v59 }
 0x130   : > { %v1015_v45 = vpop.permute.xlu0 %1014 }
 0x131   : > { %v1089_v30 = vsel %vm1071_vm7, %v1052_v12, %v1015_v45 }
 0x133   : > { %1733 = vmatmul.msk.bf16.gmra.mxu2 %vm1132_vm8, %v1089_v30 }
 0x134   : > { %v1025_v58 = vpop.permute.xlu2 %1024 }
 0x135   : > { %v1005_v17 = vpop.permute.xlu1 %1004 }
 0x138   : > { %v930_v50 = vpop.permute.xlu0 %929 }
 0x139   : > { %v1042_v53 = vsel %vm1034_vm6, %v2161_v62, %v930_v50 }
 0x13a   : > { %v1079_v10 = vsel %vm1071_vm7, %v1042_v53, %v1005_v17 }
 0x13b   : > { %1728 = vmatmul.msk.bf16.gmra.mxu0 %vm1132_vm8, %v1079_v10 }
 0x13c   : > { %v932_v9 = vpop.permute.xlu2 %931 }
 0x13d   : > { %v1044_v13 = vsel %vm1034_vm6, %v2188_v31, %v932_v9 }
 0x140   : > { %v1017_v55 = vpop.permute.xlu0 %1016 }
 0x141   : > { %v1091_v3 = vsel %vm1071_vm7, %v1054_v42, %v1017_v55 }
 0x143   : > { %1734 = vmatmul.msk.bf16.gmra.mxu2 %vm1132_vm8, %v1091_v3 }
 0x148   : > { %v950_v6 = vpop.permute.xlu1 %949  ;;  %v694_v8 = vpop.permute.xlu0 %693 }
 0x149   : > { %v1062_v49 = vsel %vm1034_vm6, %v2334_v28, %v950_v6  ;;  %v821_v61 = vsel %vm781_vm2, %v2145_v46, %v694_v8  ;;  %v1019_v46 = vpop.permute.xlu2 %1018 }
 0x14a   : > { %v1099_v62 = vsel %vm1071_vm7, %v1062_v49, %v1025_v58 }
 0x14b   : > { %1738 = vmatmul.msk.bf16.vlgmr.msra.gmra.mxu3 %vm1132_vm8, %v1099_v62 }
 0x150   : > { %v778_v4 = vpop.permute.xlu1 %777 }
 0x151   : > { %v864_v2 = vsel %vm824_vm3, %v821_v61, %v778_v4  ;;  %v696_v21 = vpop.permute.xlu2 %695 }
 0x152   : > { %v921_v39 = vrot.slane %v864_v2, 1  ;;  %v994_v11 = vrot.slane %v864_v2, 2  ;;  %v823_v37 = vsel %vm781_vm2, %v2274_v40, %v696_v21 }
 0x154   : > { %v1007_v1 = vpop.permute.xlu0 %1006  ;;  %v995_v28 = vsel %vm960_vm4, %v992_v25, %v994_v11  ;;  %v922_v51 = vsel %vm697_vm0, %v919_v7, %v921_v39 }
 0x155   : > { %1030 = vrot.lane.b32.xlu0 %v995_v28, %s1881_s18  ;;  %957 = vrot.lane.b32.xlu1 %v922_v51, %s1880_s17  ;;  %v1081_v18 = vsel %vm1071_vm7, %v1044_v13, %v1007_v1 }
 0x156   : > { %1729 = vmatmul.msk.bf16.gmra.mxu0 %vm1132_vm8, %v1081_v18 }
 0x158   : > { %v944_v19 = vpop.permute.xlu1 %943 }
 0x159   : > { %v1056_v20 = vsel %vm1034_vm6, %v2197_v24, %v944_v19  ;;  %v1009_v41 = vpop.permute.xlu2 %1008 }
 0x15a   : > { %v1093_v31 = vsel %vm1071_vm7, %v1056_v20, %v1019_v46 }
 0x15b   : > { %1735 = vmatmul.msk.bf16.gmra.mxu2 %vm1132_vm8, %v1093_v31 }
 0x15c   : > { %v952_v23 = vpop.permute.xlu0 %951 }
 0x15d   : > { %v1064_v24 = vsel %vm1034_vm6, %v2287_v14, %v952_v23 }
 0x161   : > { %v954_v5 = vpop.permute.xlu2 %953 }
 0x162   : > { %v1066_v44 = vsel %vm1034_vm6, %v2292_v38, %v954_v5 }
 0x164   : > { %v780_v7 = vpop.permute.xlu0 %779 }
 0x165   : > { %v866_v25 = vsel %vm824_vm3, %v823_v37, %v780_v7 }
 0x166   : > { %v996_v16 = vrot.slane %v866_v25, 2 }
 0x168   : > { %v997_v32 = vsel %vm960_vm4, %v994_v11, %v996_v16 }
 0x169   : > { %1032 = vrot.lane.b32.xlu2 %v997_v32, %s1881_s18  ;;  %v1011_v47 = vpop.permute.xlu2 %1010 }
 0x16c   : > { %v946_v29 = vpop.permute.xlu0 %945 }
 0x16d   : > { %v1058_v14 = vsel %vm1034_vm6, %v2238_v0, %v946_v29 }
 0x170   : > { %v1027_v48 = vpop.permute.xlu1 %1026 }
 0x171   : > { %v1101_v33 = vsel %vm1071_vm7, %v1064_v24, %v1027_v48  ;;  %v956_v58 = vpop.permute.xlu2 %955 }
 0x172   : > { %1739 = vmatmul.msk.bf16.gmra.mxu3 %vm1132_vm8, %v1101_v33  ;;  %v1068_v6 = vsel %vm1034_vm6, %v2303_v43, %v956_v58 }
 0x178   : > { %v934_v34 = vpop.permute.xlu1 %933 }
 0x179   : > { %v1046_v40 = vsel %vm1034_vm6, %v2230_v56, %v934_v34 }
 0x17a   : > { %v1083_v36 = vsel %vm1071_vm7, %v1046_v40, %v1009_v41 }
 0x17b   : > { %1730 = vmatmul.msk.bf16.gmra.mxu0 %vm1132_vm8, %v1083_v36 }
 0x180   : > { %v1021_v15 = vpop.permute.xlu1 %1020  ;;  %v1029_v57 = vpop.permute.xlu0 %1028 }
 0x181   : > { %v1095_v26 = vsel %vm1071_vm7, %v1058_v14, %v1021_v15  ;;  %v1103_v63 = vsel %vm1071_vm7, %v1066_v44, %v1029_v57 }
 0x182   : > { %1736 = vmatmul.msk.bf16.gmra.mxu2 %vm1132_vm8, %v1095_v26  ;;  %1740 = vmatmul.msk.bf16.gmra.mxu3 %vm1132_vm8, %v1103_v63 }
 0x188   : > { %v936_v56 = vpop.permute.xlu1 %935  ;;  %v948_v0 = vpop.permute.xlu0 %947 }
 0x189   : > { %v1048_v60 = vsel %vm1034_vm6, %v2259_v22, %v936_v56  ;;  %v1060_v59 = vsel %vm1034_vm6, %v2271_v35, %v948_v0  ;;  %v2485_v45 = vpop.f32.mrf.mxu0  ;;  %v2494_v22 = vld [vmem:[%s2640_s3] ss:$0 sm:$0xff] }
 0x18a   : > { %v1085_v38 = vsel %vm1071_vm7, %v1048_v60, %v1011_v47 }
 0x18b   : > { %1731 = vmatmul.msk.bf16.gmra.mxu0 %vm1132_vm8, %v1085_v38 }
 0x190   : > { %v1023_v27 = vpop.permute.xlu1 %1022 }
 0x191   : > { %v1097_v12 = vsel %vm1071_vm7, %v1060_v59, %v1023_v27  ;;  %v2487_v30 = vpop.f32.mrf.mxu0 }
 0x192   : > { %1737 = vmatmul.msk.bf16.gmra.mxu2 %vm1132_vm8, %v1097_v12 }
 0x199   : > { %v2489_v17 = vpop.f32.mrf.mxu0 }
 0x1a1   : > { %v2498_v55 = vpop.f32.mrf.mxu0 }
 0x1a6   : > { %v1217_v50 = vpop.f32.mrf.mxu2 }
 0x1a7   : > { %v1218_v35 = vadd.f32 %v2494_v22, %v1217_v50 }
 0x1a9   : > { %v1286_v42 = vmax.f32 %v1218_v35, 0.0  ;;  %v2500_v3 = vpop.f32.mrf.mxu0 }
 0x1ae   : > { %v1219_v53 = vpop.f32.mrf.mxu2 }
 0x1af   : > { %v1220_v10 = vadd.f32 %v2494_v22, %v1219_v53 }
 0x1b1   : > { %v1287_v54 = vmax.f32 %v1220_v10, 0.0  ;;  %v2506_v8 = vpop.f32.mrf.mxu0 }
 0x1b3   : > { %1318 = vmatpush.msra.mxu1 %v1287_v54 }
 0x1b5   : > { %1319 = vmatpush.msra.mxu1 %v1286_v42 }
 0x1b6   : > { %v2508_v9 = vpop.f32.mrf.mxu2 }
 0x1b9   : > { %v1197_v4 = vpop.f32.mrf.mxu0 }
 0x1ba   : > { %v1198_v54 = vadd.f32 %v2494_v22, %v1197_v4 }
 0x1be   : > { %v2512_v39 = vpop.f32.mrf.mxu2 }
 0x1c1   : > { %v1199_v43 = vpop.f32.mrf.mxu0 }
 0x1c2   : > { %v1200_v35 = vadd.f32 %v2494_v22, %v1199_v43  ;;  %v1278_v43 = vmax.f32 %v1198_v54, 0.0  ;;  %v1844_v54 = vld [vmem:[%s2643_s6 + $0x20] sm:$0xff] }
 0x1c3   : > { %v1033_v11 = vpop.permute.xlu2 %1032 }
 0x1c6   : > { %v2516_v1 = vpop.f32.mrf.mxu2 }
 0x1c7   : > { %v1031_v49 = vpop.permute.xlu0 %1030  ;;  %v958_v61 = vpop.permute.xlu1 %957 }
 0x1c8   : > { %v1105_v62 = vsel %vm1071_vm7, %v1068_v6, %v1031_v49  ;;  %v1070_v2 = vsel %vm1034_vm6, %v2366_v52, %v958_v61  ;;  %v1279_v61 = vmax.f32 %v1200_v35, 0.0  ;;  %v1846_v35 = vld [vmem:[%s2643_s6 + $0x30] sm:$0xff] }
 0x1c9   : > { %1741 = vmatmul.msk.bf16.gmra.mxu3 %vm1132_vm8, %v1105_v62  ;;  %v1107_v13 = vsel %vm1071_vm7, %v1070_v2, %v1033_v11  ;;  %v1195_v62 = vadd.f32 %v2494_v22, %v2506_v8 }
 0x1ce   : > { %v1247_v28 = vpop.f32.mrf.mxu3  ;;  %v2518_v18 = vpop.f32.mrf.mxu2 }
 0x1cf   : > { %v1248_v60 = vadd.f32 %v2494_v22, %v1247_v28 }
 0x1d1   : > { %v1298_v53 = vmax.f32 %v1248_v60, 0.0 }
 0x1d3   : > { %v1202_v51 = vpop.f32.mrf.mxu0 }
 0x1d4   : > { %v1203_v12 = vadd.f32 %v2494_v22, %v1202_v51  ;;  %v1190_v51 = vadd.f32 %v2494_v22, %v2498_v55  ;;  %v1185_v55 = vadd.f32 %v2494_v22, %v2487_v30  ;;  %v1225_v30 = vadd.f32 %v2494_v22, %v2512_v39 }
 0x1d6   : > { %v1249_v46 = vpop.f32.mrf.mxu3  ;;  %v1280_v42 = vmax.f32 %v1203_v12, 0.0 }
 0x1d7   : > { %v1250_v57 = vadd.f32 %v2494_v22, %v1249_v46  ;;  %v1277_v46 = vmax.f32 %v1195_v62, 0.0 }
 0x1d9   : > { %1742 = vmatmul.msk.bf16.gmra.mxu3 %vm1132_vm8, %v1107_v13  ;;  %v1299_v27 = vmax.f32 %v1250_v57, 0.0  ;;  %v1193_v13 = vadd.f32 %v2494_v22, %v2500_v3  ;;  %v1834_v57 = vld [vmem:[%s2641_s4 + $0x10] sm:$0xff] }
 0x1db   : > { %v1204_v19 = vpop.f32.mrf.mxu0  ;;  %v1276_v3 = vmax.f32 %v1193_v13, 0.0  ;;  %v1841_v13 = vld [vmem:[%s2643_s6 + $0x8] sm:$0xff] }
 0x1dc   : > { %v1205_v0 = vadd.f32 %v2494_v22, %v1204_v19 }
 0x1de   : > { %v2520_v20 = vpop.f32.mrf.mxu2  ;;  %v1281_v10 = vmax.f32 %v1205_v0, 0.0 }
 0x1e6   : > { %v2522_v23 = vpop.f32.mrf.mxu2 }
 0x1e7   : > { %v1235_v8 = vadd.f32 %v2494_v22, %v2522_v23  ;;  %v1230_v23 = vadd.f32 %v2494_v22, %v2518_v18 }
 0x1f5   : > { %v1252_v31 = vpop.f32.mrf.mxu3 }
 0x1f6   : > { %v1253_v5 = vadd.f32 %v2494_v22, %v1252_v31  ;;  %v1188_v31 = vadd.f32 %v2494_v22, %v2489_v17  ;;  %v1183_v17 = vadd.f32 %v2494_v22, %v2485_v45 }
 0x1f8   : > { %v1207_v52 = vpop.f32.mrf.mxu0  ;;  %v1300_v38 = vmax.f32 %v1253_v5, 0.0  ;;  %v1272_v18 = vmax.f32 %v1183_v17, 0.0  ;;  %v1837_v5 = vld [vmem:[%s2641_s4 + $0x28] sm:$0xff] }
 0x1f9   : > { %v1208_v63 = vadd.f32 %v2494_v22, %v1207_v52  ;;  %v1233_v52 = vadd.f32 %v2494_v22, %v2520_v20  ;;  %v1228_v20 = vadd.f32 %v2494_v22, %v2516_v1 }
 0x1fb   : > { %v1282_v50 = vmax.f32 %v1208_v63, 0.0  ;;  %v1290_v45 = vmax.f32 %v1228_v20, 0.0 }
 0x1fd   : > { %v1254_v21 = vpop.f32.mrf.mxu3 }
 0x1fe   : > { %v1255_v41 = vadd.f32 %v2494_v22, %v1254_v21 }
 0x200   : > { %v1209_v37 = vpop.f32.mrf.mxu0  ;;  %v1301_v26 = vmax.f32 %v1255_v41, 0.0  ;;  %v1308_v41 = vld [vmem:[%s2638_s1] sm:$0x7] }
 0x201   : > { %v1210_v14 = vadd.f32 %v2494_v22, %v1209_v37  ;;  %v1275_v37 = vmax.f32 %v1190_v51, 0.0  ;;  %v1311_v39 = vperm.slane %v1308_v41, 1 }
 0x203   : > { %v1283_v59 = vmax.f32 %v1210_v14, 0.0 }
 0x205   : > { %v1237_v7 = vpop.f32.mrf.mxu2  ;;  %v1257_v25 = vpop.f32.mrf.mxu3 }
 0x206   : > { %v1258_v48 = vadd.f32 %v2494_v22, %v1257_v25  ;;  %v1238_v4 = vadd.f32 %v2494_v22, %v1237_v7  ;;  %v1293_v7 = vmax.f32 %v1235_v8, 0.0  ;;  %v1274_v25 = vmax.f32 %v1188_v31, 0.0  ;;  %v1869_v31 = vld [vmem:[%s2644_s7] ss:$0 sm:$0xff] }
 0x208   : > { %v1212_v16 = vpop.f32.mrf.mxu0  ;;  %v1302_v44 = vmax.f32 %v1258_v48, 0.0  ;;  %v1294_v21 = vmax.f32 %v1238_v4, 0.0  ;;  %v1223_v48 = vadd.f32 %v2494_v22, %v2508_v9  ;;  %v1839_v9 = vld [vmem:[%s2641_s4 + $0x38] sm:$0xff]  ;;  %v1868_v4 = vld [vmem:[%s2642_s5] ss:$0 sm:$0xff] }
 0x209   : > { %v1213_v40 = vadd.f32 %v2494_v22, %v1212_v16  ;;  %v1292_v16 = vmax.f32 %v1233_v52, 0.0  ;;  %1447 = vmatpush.bf16.msrb.mxu3 %v1839_v9 }
 0x20a   : > { %v1288_v1 = vmax.f32 %v1223_v48, 0.0 }
 0x20b   : > { %v1284_v56 = vmax.f32 %v1213_v40, 0.0  ;;  %v1838_v40 = vld [vmem:[%s2641_s4 + $0x30] sm:$0xff] }
 0x20d   : > { %v1239_v32 = vpop.f32.mrf.mxu2  ;;  %v1259_v24 = vpop.f32.mrf.mxu3  ;;  %1448 = vmatpush.bf16.msrb.mxu3 %v1838_v40 }
 0x20e   : > { %v1260_v33 = vadd.f32 %v2494_v22, %v1259_v24  ;;  %v1240_v2 = vadd.f32 %v2494_v22, %v1239_v32  ;;  %v1273_v32 = vmax.f32 %v1185_v55, 0.0  ;;  %v1291_v24 = vmax.f32 %v1230_v23, 0.0 }
 0x210   : > { %v1303_v29 = vmax.f32 %v1260_v33, 0.0  ;;  %v1214_v34 = vpop.f32.mrf.mxu0  ;;  %v1295_v19 = vmax.f32 %v1240_v2, 0.0  ;;  %v1289_v33 = vmax.f32 %v1225_v30, 0.0 }
 0x211   : > { %v1215_v36 = vadd.f32 %v2494_v22, %v1214_v34  ;;  %1449 = vmatpush.bf16.msrb.mxu3 %v1837_v5 }
 0x212   : > { %1338 = vmatpush.msrb.mxu2 %v1303_v29  ;;  %v1310_v29 = vperm.slane %v1308_v41, 0 }
 0x213   : > { %v1285_v15 = vmax.f32 %v1215_v36, 0.0 }
 0x214   : > { %1339 = vmatpush.msrb.mxu2 %v1302_v44  ;;  %v1836_v44 = vld [vmem:[%s2641_s4 + $0x20] sm:$0xff] }
 0x215   : > { %v1242_v47 = vpop.f32.mrf.mxu2  ;;  %1320 = vmatpush.msra.mxu1 %v1285_v15  ;;  %1450 = vmatpush.bf16.msrb.mxu3 %v1836_v44  ;;  %v1835_v15 = vld [vmem:[%s2641_s4 + $0x18] sm:$0xff] }
 0x216   : > { %1340 = vmatpush.msrb.mxu2 %v1301_v26  ;;  %v1243_v6 = vadd.f32 %v2494_v22, %v1242_v47 }
 0x217   : > { %1321 = vmatpush.msra.mxu1 %v1284_v56 }
 0x218   : > { %1341 = vmatpush.msrb.mxu2 %v1300_v38  ;;  %v1296_v28 = vmax.f32 %v1243_v6, 0.0  ;;  %v1842_v6 = vld [vmem:[%s2643_s6 + $0x10] sm:$0xff] }
 0x219   : > { %1322 = vmatpush.msra.mxu1 %v1283_v59  ;;  %1451 = vmatpush.bf16.msrb.mxu3 %v1835_v15 }
 0x21a   : > { %1342 = vmatpush.msrb.mxu2 %v1299_v27  ;;  %v1312_v27 = vperm.slane %v1308_v41, 2 }
 0x21b   : > { %1323 = vmatpush.msra.mxu1 %v1282_v50  ;;  %v1833_v50 = vld [vmem:[%s2641_s4 + $0x8] sm:$0xff] }
 0x21c   : > { %1343 = vmatpush.msrb.mxu2 %v1298_v53  ;;  %v1832_v53 = vld [vmem:[%s2641_s4] sm:$0xff] }
 0x21d   : > { %v1244_v58 = vpop.f32.mrf.mxu2  ;;  %1324 = vmatpush.msra.mxu1 %v1281_v10  ;;  %1452 = vmatpush.bf16.msrb.mxu3 %v1834_v57  ;;  %v1845_v10 = vld [vmem:[%s2643_s6 + $0x28] sm:$0xff] }
 0x21e   : > { %v1245_v49 = vadd.f32 %v2494_v22, %v1244_v58 }
 0x21f   : > { %1325 = vmatpush.msra.mxu1 %v1280_v42  ;;  %v1843_v42 = vld [vmem:[%s2643_s6 + $0x18] sm:$0xff] }
 0x220   : > { %v1297_v11 = vmax.f32 %v1245_v49, 0.0 }
 0x221   : > { %1326 = vmatpush.msra.mxu1 %v1279_v61  ;;  %1453 = vmatpush.bf16.msrb.mxu3 %v1833_v50 }
 0x222   : > { %1344 = vmatpush.msrb.mxu2 %v1297_v11 }
 0x223   : > { %1327 = vmatpush.msra.mxu1 %v1278_v43  ;;  %v1840_v43 = vld [vmem:[%s2643_s6] sm:$0xff] }
 0x224   : > { %1345 = vmatpush.msrb.mxu2 %v1296_v28 }
 0x225   : > { %1328 = vmatpush.msra.mxu1 %v1277_v46  ;;  %1454 = vmatpush.bf16.msrb.mxu3 %v1832_v53 }
 0x226   : > { %1346 = vmatpush.msrb.mxu2 %v1295_v19 }
 0x227   : > { %1329 = vmatpush.msra.mxu1 %v1276_v3 }
 0x228   : > { %1347 = vmatpush.msrb.mxu2 %v1294_v21 }
 0x229   : > { %1330 = vmatpush.msra.mxu1 %v1275_v37 }
 0x22a   : > { %1348 = vmatpush.msrb.mxu2 %v1293_v7 }
 0x22b   : > { %1331 = vmatpush.msra.mxu1 %v1274_v25 }
 0x22c   : > { %1349 = vmatpush.msrb.mxu2 %v1292_v16 }
 0x22d   : > { %1332 = vmatpush.msra.mxu1 %v1273_v32 }
 0x22e   : > { %1350 = vmatpush.msrb.mxu2 %v1291_v24 }
 0x22f   : > { %1333 = vmatpush.msra.mxu1 %v1272_v18 }
 0x230   : > { %1351 = vmatpush.msrb.mxu2 %v1290_v45  ;;  %1334 = vmatmul.f32.vlgmr.msra.gmra.mxu1 %v1310_v29 }
 0x232   : > { %1352 = vmatpush.msrb.mxu2 %v1289_v33 }
 0x234   : > { %1353 = vmatpush.msrb.mxu2 %v1288_v1 }
 0x235   : > { %1354 = vmatmul.f32.vlgmr.msrb.gmra.mxu2 %v1311_v39 }
 0x24c   : > { %v1262_v34 = vpop.f32.mrf.mxu3 }
 0x24d   : > { %v1263_v38 = vadd.f32 %v2494_v22, %v1262_v34 }
 0x24f   : > { %v1304_v12 = vmax.f32 %v1263_v38, 0.0 }
 0x254   : > { %v1264_v36 = vpop.f32.mrf.mxu3 }
 0x255   : > { %v1265_v47 = vadd.f32 %v2494_v22, %v1264_v36 }
 0x257   : > { %v1305_v59 = vmax.f32 %v1265_v47, 0.0 }
 0x25c   : > { %v1267_v14 = vpop.f32.mrf.mxu3 }
 0x25d   : > { %v1268_v63 = vadd.f32 %v2494_v22, %v1267_v14 }
 0x25f   : > { %v1306_v0 = vmax.f32 %v1268_v63, 0.0 }
 0x264   : > { %v1269_v26 = vpop.f32.mrf.mxu3 }
 0x265   : > { %v1270_v56 = vadd.f32 %v2494_v22, %v1269_v26  ;;  %v1847_v22 = vld [vmem:[%s2643_s6 + $0x38] sm:$0xff] }
 0x267   : > { %v1307_v60 = vmax.f32 %v1270_v56, 0.0 }
 0x269   : > { %1370 = vmatpush.msrb.mxu1 %v1307_v60 }
 0x26b   : > { %1371 = vmatpush.msrb.mxu1 %v1306_v0 }
 0x26d   : > { %1372 = vmatpush.msrb.mxu1 %v1305_v59 }
 0x26f   : > { %1373 = vmatpush.msrb.mxu1 %v1304_v12 }
 0x270   : > { %1743 = vmatmul.msk.f32.vlgmr.msrb.gmra.mxu1 %vm1315_vm9, %v1312_v27 }
 0x271   : > { %1530 = vmatpush.bf16.msra.mxu1 %v1847_v22 }
 0x275   : > { %1531 = vmatpush.bf16.msra.mxu1 %v1846_v35 }
 0x279   : > { %1532 = vmatpush.bf16.msra.mxu1 %v1845_v10 }
 0x27d   : > { %1533 = vmatpush.bf16.msra.mxu1 %v1844_v54 }
 0x281   : > { %1534 = vmatpush.bf16.msra.mxu1 %v1843_v42 }
 0x285   : > { %1535 = vmatpush.bf16.msra.mxu1 %v1842_v6 }
 0x289   : > { %1536 = vmatpush.bf16.msra.mxu1 %v1841_v13 }
 0x28d   : > { %1537 = vmatpush.bf16.msra.mxu1 %v1840_v43 }
 0x2ad   : > { %v1335_v58 = vpop.f32.mrf.mxu1 }
 0x2b8   : > { %v1355_v49 = vpop.f32.mrf.mxu2 }
 0x2b9   : > { %v1356_v62 = vadd.f32 %v1355_v49, %v1335_v58 }
 0x2ed   : > { %v1375_v61 = vpop.f32.mrf.mxu1 }
 0x2ee   : > { %v1376_v2 = vadd.f32 %v1375_v61, %v1356_v62 }
 0x2f0   : > { %v1378_v11 = vpack.c.bf16 %v1376_v2, %v1376_v2 }
 0x2f2   : > { %1455 = vmatmul.bf16.vlgmr.msrb.gmra.mxu3 %v1378_v11 }
 0x375   : > { %v1456_v28 = vpop.f32.mrf.mxu3 }
 0x376   : > { %v1457_v51 = vadd.f32 %v1868_v4, %v1456_v28 }
 0x378   : > { %v1460_v46 = vmax.f32 %v1457_v51, 0.0 }
 0x37a   : > { %v1461_v8 = vpack.c.bf16 %v1460_v46, %v1460_v46  ;;  %1543 = vst [vmem:[%s341_s28] sm:$0xff] %v1460_v46 }
 0x37c   : > { %1538 = vmatmul.bf16.vlgmr.msra.gmra.mxu1 %v1461_v8 }
 0x37d   : > { %v1458_v19 = vpop.f32.mrf.mxu3 }
 0x3f9   : > { %v1539_v3 = vpop.f32.mrf.mxu1 }
 0x3fa   : > { %v1540_v52 = vadd.f32 %v1869_v31, %v1539_v3 }
 0x3fc   : > { %1544 = vst [vmem:[%s337_s14] sm:$0xff] %v1540_v52 }
 0x401   : > { %v1541_v21 = vpop.f32.mrf.mxu1 }
 0x402 PF: > { %s20_s30 = sadd.s32 1, %s1876_s30  }
 0x403   : > { %p17_p4 = scmp.ge.s32.totalorder %s20_s30, 4  }
 0x405   :  { %19 = sbr.rel (!%p17_p4) target bundleno = 1 (0x1), region = 94 }

</bundles_post_ra>
